<compile_context>
chip_gen: v7x
topology: tpu7x:2x2x1
jax: 0.10.0
libtpu: 0.0.40
codegen_flags: <defaults>
</compile_context>

<pallas_src>
import jax
import jax.numpy as jnp
from jax.experimental import pallas as pl
from jax.experimental.pallas import tpu as pltpu


def mlp_kernel(x_ref, w1_ref, b1_ref, w2r_ref, b2_ref, o_ref):
    # fc1 on the MXU, f32 accumulation.
    h = jnp.dot(x_ref[...], w1_ref[...], preferred_element_type=jnp.float32)
    h = jnp.maximum(h + b1_ref[...], 0.0)                    # bias + ReLU (VPU)
    # fc2 (hidden -> 1): elementwise multiply (VALU) + lane reduction (XLU).
    y = jnp.sum(h * w2r_ref[...], axis=-1, keepdims=True)    # (B, 1) f32
    y = y + b2_ref[0]                                         # scalar bias (SMEM)
    o_ref[...] = jnp.tanh(y).astype(o_ref.dtype)              # Tanh (EUP)


def mlp_forward(x, w1, b1, w2_row, b2, *, tb=512):
    """x: (B, in_dim) f32; w1: (in_dim, hidden); b1: (1, hidden);
    w2_row: (1, hidden) (PyTorch fc2.weight layout); b2: (1,) scalar."""
    B, in_dim = x.shape
    hidden = w1.shape[1]
    out_shape = jax.ShapeDtypeStruct((B, 1), jnp.float32)

    if B <= tb:
        # Single block of work: no grid, no software-pipeline prologue/epilogue.
        return pl.pallas_call(
            mlp_kernel,
            out_shape=out_shape,
            in_specs=[
                pl.BlockSpec(memory_space=pltpu.MemorySpace.VMEM),  # x
                pl.BlockSpec(memory_space=pltpu.MemorySpace.VMEM),  # w1
                pl.BlockSpec(memory_space=pltpu.MemorySpace.VMEM),  # b1
                pl.BlockSpec(memory_space=pltpu.MemorySpace.VMEM),  # w2 row
                pl.BlockSpec(memory_space=pltpu.MemorySpace.SMEM),  # b2 scalar
            ],
            out_specs=pl.BlockSpec(memory_space=pltpu.MemorySpace.VMEM),
        )(x, w1, b1, w2_row, b2)

    # Large batch: tile only the batch dim; weights/biases stay VMEM-resident
    # across the grid (index_map pinned to block (0, 0)).
    return pl.pallas_call(
        mlp_kernel,
        out_shape=out_shape,
        grid=(pl.cdiv(B, tb),),
        in_specs=[
            pl.BlockSpec((tb, in_dim), lambda i: (i, 0)),        # x tile
            pl.BlockSpec((in_dim, hidden), lambda i: (0, 0)),    # w1 resident
            pl.BlockSpec((1, hidden), lambda i: (0, 0)),         # b1 resident
            pl.BlockSpec((1, hidden), lambda i: (0, 0)),         # w2 resident
            pl.BlockSpec(memory_space=pltpu.MemorySpace.SMEM),   # b2 scalar
        ],
        out_specs=pl.BlockSpec((tb, 1), lambda i: (i, 0)),
        compiler_params=pltpu.CompilerParams(
            dimension_semantics=("parallel",)),
    )(x, w1, b1, w2_row, b2)


if __name__ == "__main__":
    batch = 8
    in_dim = 32
    hidden_dim = 64

    key = jax.random.PRNGKey(0)
    k_x, k_w1, k_b1, k_w2, k_b2 = jax.random.split(key, 5)

    # Deterministic synthetic inputs / parameters.
    x = jax.random.normal(k_x, (batch, in_dim), dtype=jnp.float32)
    w1 = jax.random.normal(k_w1, (in_dim, hidden_dim), dtype=jnp.float32) * 0.1
    b1 = jax.random.normal(k_b1, (1, hidden_dim), dtype=jnp.float32) * 0.1
    # fc2 weight in PyTorch layout (out=1, hidden) i.e. a (1, hidden) row.
    w2_row = jax.random.normal(k_w2, (1, hidden_dim), dtype=jnp.float32) * 0.1
    b2 = jax.random.normal(k_b2, (1,), dtype=jnp.float32) * 0.1

    out = mlp_forward(x, w1, b1, w2_row, b2)
    jax.block_until_ready(out)

    # Reference in plain JAX (same math as the PyTorch module).
    ref = jnp.tanh(jnp.maximum(x @ w1 + b1, 0.0) @ w2_row.T + b2[0])
    assert out.shape == (batch, 1)
    # Modest tolerance: TPU default matmul precision may differ slightly
    # between the Pallas kernel and the XLA-compiled reference.
    assert jnp.allclose(out, ref, atol=1e-2, rtol=1e-2), float(
        jnp.max(jnp.abs(out - ref)))

    print("KERNEL_OK")
</pallas_src>

<mosaic_0001>
module attributes {stable_mosaic.version = 11 : i64} {
  func.func @mlp_kernel(%arg0: memref<8x32xf32, #tpu.memory_space<vmem>>, %arg1: memref<32x64xf32, #tpu.memory_space<vmem>>, %arg2: memref<1x64xf32, #tpu.memory_space<vmem>>, %arg3: memref<1x64xf32, #tpu.memory_space<vmem>>, %arg4: memref<1xf32, #tpu.memory_space<smem>>, %arg5: memref<8x1xf32, #tpu.memory_space<vmem>>) attributes {dimension_semantics = [], scalar_prefetch = 0 : i64, scratch_operands = 0 : i64, tpu.core_type = #tpu.core_type<tc>} {
    %c0 = arith.constant 0 : index
    %c0_0 = arith.constant 0 : index
    %0 = vector.load %arg0[%c0, %c0_0] : memref<8x32xf32, #tpu.memory_space<vmem>>, vector<8x32xf32>
    %c0_1 = arith.constant 0 : index
    %c0_2 = arith.constant 0 : index
    %1 = vector.load %arg1[%c0_1, %c0_2] : memref<32x64xf32, #tpu.memory_space<vmem>>, vector<32x64xf32>
    %cst = arith.constant dense<0.000000e+00> : vector<8x64xf32>
    %2 = tpu.matmul %0, %1, %cst {dimension_numbers = #tpu.dot_dimension_numbers<[1], [0], [0], [1], [0, 0, 1, 1], [], []>} : vector<8x32xf32>, vector<32x64xf32>, vector<8x64xf32> -> vector<8x64xf32>
    %c0_3 = arith.constant 0 : index
    %c0_4 = arith.constant 0 : index
    %3 = vector.load %arg2[%c0_3, %c0_4] : memref<1x64xf32, #tpu.memory_space<vmem>>, vector<1x64xf32>
    %4 = vector.broadcast %3 : vector<1x64xf32> to vector<8x64xf32>
    %5 = arith.addf %2, %4 : vector<8x64xf32>
    %cst_5 = arith.constant 0.000000e+00 : f32
    %6 = vector.broadcast %cst_5 : f32 to vector<8x64xf32>
    %7 = arith.maximumf %5, %6 : vector<8x64xf32>
    %c0_6 = arith.constant 0 : index
    %c0_7 = arith.constant 0 : index
    %8 = vector.load %arg3[%c0_6, %c0_7] : memref<1x64xf32, #tpu.memory_space<vmem>>, vector<1x64xf32>
    %9 = vector.broadcast %8 : vector<1x64xf32> to vector<8x64xf32>
    %10 = arith.mulf %7, %9 : vector<8x64xf32>
    %cst_8 = arith.constant dense<0.000000e+00> : vector<8xf32>
    %11 = vector.multi_reduction <add>, %10, %cst_8 [1] : vector<8x64xf32> to vector<8xf32>
    %12 = vector.shape_cast %11 : vector<8xf32> to vector<8x1xf32>
    %c0_9 = arith.constant 0 : index
    %13 = memref.load %arg4[%c0_9] : memref<1xf32, #tpu.memory_space<smem>>
    %14 = vector.broadcast %13 : f32 to vector<8x1xf32>
    %15 = arith.addf %12, %14 : vector<8x1xf32>
    %16 = math.tanh %15 : vector<8x1xf32>
    %c0_10 = arith.constant 0 : index
    %c0_11 = arith.constant 0 : index
    %17 = vector.load %arg5[%c0_10, %c0_11] : memref<8x1xf32, #tpu.memory_space<vmem>>, vector<8x1xf32>
    tpu.vector_store %arg5[%c0_10, %c0_11], %16 {strides = array<i32>} : memref<8x1xf32, #tpu.memory_space<vmem>>, vector<8x1xf32>,
    return
  }
}

</mosaic_0001>

<bundles_post_ra>
// kernel: tpu_custom_call.1
= control target key start
LH: loop header
LB: loop body
LE: loop exit
PB: predicated region body
PF: predicated region fallthrough
CT: control target
= control target key end

     0   :  { %11 = vsyncpa [#allocation4], 0  ;;  %s320_s0 = inlined_call_operand.hbm [shape: f32[8,32], index: 0, kind: input, shape index: {}]   ;;  %s321_s1 = inlined_call_operand.hbm [shape: f32[32,64], index: 1, kind: input, shape index: {}]   ;;  %s322_s2 = inlined_call_operand.vmem [shape: f32[1,64], index: 2, kind: input, shape index: {}]   ;;  %s323_s3 = inlined_call_operand.vmem [shape: f32[1,64], index: 3, kind: input, shape index: {}]   ;;  %s324_s4 = inlined_call_operand.<no memory space> [shape: f32[1], index: 4, kind: input, shape index: {}]   ;;  %s325_s5 = inlined_call_operand.vmem [shape: f32[8,1], index: 5, kind: output, shape index: {}]  }
   0x1   :  { %12 = vsyncpa [#allocation6], 0  ;;  %s240_s18 = smov [#allocation3]   ;;  %s241_s20 = smov [#allocation5]  }
   0x2   :  { %s19_s19 = sshll.u32 %s240_s18, 4  ;;  %s28_s21 = sshll.u32 %s241_s20, 4  ;;  %s20_s19 = int_to_ptr.vmem [resolvable:$true] %s19_s19  ;;  %s277_s21 = int_to_ptr.vmem [resolvable:$true] %s28_s21 }
   0x3   :  { %s192_s24 = scalar_lea.hbm %s320_s0, 128 }
   0x4   :  { %p193_p0 = scmp.ne.s32.totalorder %s320_s0, %s192_s24  ;;  %p196_p1 = scmp.lt.u32.totalorder %s192_s24, %s320_s0 }
   0x6   :  { %p198_p2 = pnand %p196_p1, %p193_p0 }
   0x8   :  { %201 = shalt.err (!%p198_p2)
}
   0x9   :  { %s202_s29 = scalar_lea.vmem %s20_s19, 128  ;;  %p207_p4 = scmp.lt.s32.totalorder %s20_s19, %s20_s19 }
   0xa   :  { %p203_p3 = scmp.ne.s32.totalorder %s20_s19, %s202_s29  ;;  %p208_p5 = scmp.lt.s32.totalorder %s202_s29, %s202_s29 }
   0xc   :  { %p209_p6 = por %p208_p5, %p207_p4 }
   0xe   :  { %p210_p7 = pnand %p209_p6, %p203_p3 }
  0x10   :  { %213 = shalt.err (!%p210_p7)
}
  0x11   :  { %22 = dma.hbm_to_vmem [thread:$0]  %s320_s0, 128, %s20_s19, [#allocation4]  }
  0x12   :  { %s214_s9 = scalar_lea.hbm %s321_s1, 512 }
  0x13   :  { %p215_p8 = scmp.ne.s32.totalorder %s321_s1, %s214_s9  ;;  %p218_p9 = scmp.lt.u32.totalorder %s214_s9, %s321_s1 }
  0x15   :  { %p220_p10 = pnand %p218_p9, %p215_p8 }
  0x17   :  { %223 = shalt.err (!%p220_p10)
}
  0x18   :  { %s224_s14 = scalar_lea.vmem %s277_s21, 512  ;;  %p229_p12 = scmp.lt.s32.totalorder %s277_s21, %s277_s21 }
  0x19   :  { %p225_p11 = scmp.ne.s32.totalorder %s277_s21, %s224_s14  ;;  %p230_p13 = scmp.lt.s32.totalorder %s224_s14, %s224_s14 }
  0x1b   :  { %p231_p0 = por %p230_p13, %p229_p12 }
  0x1d   :  { %p232_p1 = pnand %p231_p0, %p225_p11 }
  0x1f   :  { %235 = shalt.err (!%p232_p1)
}
  0x20   :  { %s242_s0 = smov 128   ;;  %s243_s15 = smov 8  }
  0x21   :  { %34 = dma.hbm_to_vmem [thread:$0]  %s321_s1, 512, %s277_s21, [#allocation6], %s242_s0, %s242_s0, %s243_s15  }
  0x22   :  { %236 = dma.done.wait [#allocation4], 128  }
  0x23   :  { %237 = vsyncadd [#allocation4], 4294967168 }
  0x24   :  { %238 = dma.done.wait [#allocation6], 512  }
  0x25   :  { %239 = vsyncadd [#allocation6], 4294966784  ;;  %v244_v0 = vmov 0.0|0.0   ;;  %vm245_vm0 = vmmov 0   ;;  %v246_v1 = vmov 0.0   ;;  %v48_v2 = vld [vmem:[#allocation5] sm:$0xff]  ;;  %v147_v17 = vstv %s324_s4 }
  0x26   :  { %177 = vmatprep.subr.bf16.mxu0 %v244_v0  ;;  %174 = vmatprep.mubr.msk.f32.mxu0 %vm245_vm0, %v246_v1  ;;  %v49_v3 = vld [vmem:[#allocation5 + $0x8] sm:$0xff]  ;;  %v50_v4 = vld [vmem:[#allocation5 + $0x10] sm:$0xff]  ;;  %v51_v6 = vld [vmem:[#allocation5 + $0x18] sm:$0xff]  ;;  %vm59_vm1 = vcmask 261120   ;;  %vm142_vm2 = vcmask 523264   ;;  %vm150_vm3 = vcmask 7168  }
  0x27   :  { %v178_v5 = vpack.c.bf16 %v49_v3, %v48_v2  ;;  %v181_v7 = vpack.c.bf16 %v51_v6, %v50_v4  ;;  %v47_v8 = vld [vmem:[#allocation3] sm:$0xff] }
  0x28   :  { %v158_v9 = vld [vmem:[%s322_s2] ss:$0 sm:$0xff] }
  0x29   :  { %179 = vmatpush3.bf16.msra.mxu0 %v178_v5  ;;  %v160_v13 = vld [vmem:[%s323_s3] ss:$0 sm:$0xff] }
  0x2a   :  { %180 = vmatprep.subr.bf16.mxu0 %v244_v0 }
  0x2d   :  { %182 = vmatpush3.bf16.msra.mxu0 %v181_v7 }
  0x30   :  { %175 = vmatmul.mubr.msk.f32.vlgmr.msra.gmra.mrb[0].mxu0 %vm59_vm1, %v47_v8 }
 0x103   :  { %v129_v10 = vpop.f32.mrb[0].mxu0 }
 0x104   :  { %v130_v11 = vadd.f32 %v158_v9, %v129_v10  ;;  %v176_v12 = vpop.f32.mrb[1].mxu0 }
 0x106   :  { %v133_v14 = vmax.f32 %v130_v11, 0.0 }
 0x108   :  { %v141_v15 = vmul.f32 %v160_v13, %v133_v14 }
 0x10a   :  { %v143_v16 = vsel %vm142_vm2, %v141_v15, 0.0 }
 0x10b   :  { %144 = vadd.xlane.f32.xlu0 %v143_v16 }
 0x198   :  { %v145_v18 = vpop.xlane.xlu0 %144 }
 0x199   :  { %v148_v19 = vadd.f32 %v147_v17, %v145_v18 }
 0x19b   :  { %190 = vtanh.f32 %v148_v19 }
 0x1a5   :  { %v191_v20 = vpop.eup %190 }
 0x1a6   :  { %151 = vst.msk [vmem:[%s325_s5] sm:$0xff] %vm150_vm3, %v191_v20 }
 0x1a7   :  { %156 = vsyncpa [#allocation4], 1 }
 0x1a8   :  { %157 = vsyncpa [#allocation6], 1 }

</bundles_post_ra>
